<compile_context>
chip_gen: v7x
topology: tpu7x:2x2x1
jax: 0.10.0
libtpu: 0.0.40
codegen_flags: <defaults>
</compile_context>

<pallas_src>
import math
from typing import NamedTuple

import jax
import jax.numpy as jnp
from jax import lax
from jax.experimental import pallas as pl
from jax.experimental.pallas import tpu as pltpu

_VMEM = pl.BlockSpec(memory_space=pltpu.MemorySpace.VMEM)


# ---------------------------------------------------------------------------
# cons = normalize(dict_w, dim=0).T @ normalize(dict_w, dim=0)
# Batch-invariant: compute once (it is cached inside fea_refine_prepare).
# Single f32 input (no dict_w.T copy); f32 MXU Gram since it is off the hot
# path and may feed a regularization loss.
# ---------------------------------------------------------------------------
def _cons_kernel(dw_ref, cons_ref):
    dw = dw_ref[...]                                            # (dim, nd) f32
    # rsqrt(max(ss, 1e-24)) == 1 / max(sqrt(ss), 1e-12)  (F.normalize eps).
    inv = lax.rsqrt(jnp.maximum(
        jnp.sum(dw * dw, axis=0, keepdims=True), 1e-24))        # (1, nd)
    fm = dw * inv                                               # f32 normalized
    cons_ref[...] = jnp.dot(fm.T, fm, preferred_element_type=jnp.float32)


def fea_refine_cons(dict_w):
    """dict_w: (dim, num_dicts) f32 -> (num_dicts, num_dicts) f32."""
    dim, nd = dict_w.shape
    cost = pl.CostEstimate(
        flops=2 * nd * dim * nd + 4 * dim * nd,
        transcendentals=nd,
        bytes_accessed=dim * nd * 4 + nd * nd * 4)
    return pl.pallas_call(
        _cons_kernel,
        out_shape=jax.ShapeDtypeStruct((nd, nd), jnp.float32),
        in_specs=[_VMEM],
        out_specs=_VMEM,
        cost_estimate=cost,
    )(dict_w.astype(jnp.float32))


# ---------------------------------------------------------------------------
# One-time parameter preparation (explicit cache, per review item 5).
# ---------------------------------------------------------------------------
class FeaRefineParams(NamedTuple):
    wqt: jax.Array   # (dim, hidd) bf16   == Wq^T
    bq: jax.Array    # (1, hidd)   f32
    k: jax.Array     # (hidd, nd)  bf16   == (Wk @ dict + bk) / sqrt(hidd)
    dwt: jax.Array   # (nd, dim)   bf16   == dict^T
    cons: jax.Array  # (nd, nd)    f32


def fea_refine_prepare(dict_w, wq, bq, wk, bk):
    """Precompute every batch-invariant quantity once (cache the result)."""
    dim, nd = dict_w.shape
    hidd = wq.shape[0]
    inv_sqrt_dk = 1.0 / math.sqrt(float(hidd))
    dw32 = dict_w.astype(jnp.float32)
    k = (wk.astype(jnp.float32) @ dw32
         + bk.astype(jnp.float32)[:, None]) * inv_sqrt_dk        # (hidd, nd)
    return FeaRefineParams(
        wqt=wq.T.astype(jnp.bfloat16),
        bq=bq.reshape(1, hidd).astype(jnp.float32),
        k=k.astype(jnp.bfloat16),
        dwt=dw32.T.astype(jnp.bfloat16),
        cons=fea_refine_cons(dict_w),
    )


# ---------------------------------------------------------------------------
# Per-call attention + residual (the hot path).  k / bk / Wk never appear.
# ---------------------------------------------------------------------------
def _attend_kernel(feat_ref, wqt_ref, k_ref, bq_ref, dwt_ref, out_ref):
    feat = feat_ref[...]                                        # (bb, dim) f32

    # q = Conv1d_query(feat) == feat @ Wq^T + bq                -> (bb, hidd)
    q = jnp.dot(feat.astype(jnp.bfloat16), wqt_ref[...],
                preferred_element_type=jnp.float32) + bq_ref[...]

    # scores = q @ k   (k already contains bk and the 1/sqrt(d_k) scale).
    scores = jnp.dot(q.astype(jnp.bfloat16), k_ref[...],
                     preferred_element_type=jnp.float32)        # (bb, nd)

    # Stable softmax over the dictionary axis (f32 on the VPU/EUP).
    m = jnp.max(scores, axis=-1, keepdims=True)
    p = jnp.exp(scores - m)
    probs = p * pl.reciprocal(jnp.sum(p, axis=-1, keepdims=True), approx=True)

    # output = probs @ dict^T                                   -> (bb, dim)
    out = jnp.dot(probs.astype(jnp.bfloat16), dwt_ref[...],
                  preferred_element_type=jnp.float32)

    # Residual average.
    out_ref[...] = (out + feat) * 0.5


def fea_refine_attend(feat2, params, *, block_b=128):
    """feat2: (B, dim) f32, params: FeaRefineParams -> (B, dim) f32."""
    B, dim = feat2.shape
    hidd = params.wqt.shape[1]
    nd = params.k.shape[1]

    cost = pl.CostEstimate(
        flops=2 * B * hidd * (dim + nd) + 2 * B * nd * dim + 6 * B * nd
              + 2 * B * dim,
        transcendentals=B * (nd + 1),
        bytes_accessed=(2 * B * dim * 4                # feat in + out
                        + dim * hidd * 2               # Wq^T (bf16)
                        + hidd * nd * 2                # k    (bf16)
                        + nd * dim * 2                 # dict^T (bf16)
                        + hidd * 4))                   # bq

    args = (feat2, params.wqt, params.k, params.bq, params.dwt)

    # Batched path: tile B with a parallel grid (sharded across TCs on v7x);
    # weights use constant block indices so they stay VMEM-resident.
    if B % block_b == 0 and B // block_b > 1 and block_b % 8 == 0:
        return pl.pallas_call(
            _attend_kernel,
            out_shape=jax.ShapeDtypeStruct((B, dim), jnp.float32),
            grid=(B // block_b,),
            in_specs=[
                pl.BlockSpec((block_b, dim), lambda i: (i, 0)),
                pl.BlockSpec((dim, hidd), lambda i: (0, 0)),
                pl.BlockSpec((hidd, nd), lambda i: (0, 0)),
                pl.BlockSpec((1, hidd), lambda i: (0, 0)),
                pl.BlockSpec((nd, dim), lambda i: (0, 0)),
            ],
            out_specs=pl.BlockSpec((block_b, dim), lambda i: (i, 0)),
            compiler_params=pltpu.CompilerParams(
                dimension_semantics=("parallel",)),
            cost_estimate=cost,
        )(*args)

    # Small-batch path: single VMEM-resident block, no grid.
    return pl.pallas_call(
        _attend_kernel,
        out_shape=jax.ShapeDtypeStruct((B, dim), jnp.float32),
        in_specs=[_VMEM] * 5,
        out_specs=_VMEM,
        cost_estimate=cost,
    )(*args)


# ---------------------------------------------------------------------------
# Fused single pallas_call (out + cons) for callers that cannot cache params:
# one launch instead of two, dict_w DMA'd once and shared by both paths.
# Uses the reassociated score path (never materializes k) — best at small B.
# ---------------------------------------------------------------------------
def _fused_kernel(feat_ref, dw_ref, wqt_ref, bq_ref, wk_ref, bk_ref,
                  out_ref, cons_ref):
    dw = dw_ref[...]                                            # (dim, nd) f32

    # ---- cons (f32 normalize + f32 MXU Gram) ----
    inv = lax.rsqrt(jnp.maximum(
        jnp.sum(dw * dw, axis=0, keepdims=True), 1e-24))
    fm = dw * inv
    cons_ref[...] = jnp.dot(fm.T, fm, preferred_element_type=jnp.float32)

    # ---- attention + residual ----
    feat = feat_ref[...]                                        # (B, dim) f32
    hidd = wk_ref.shape[0]
    inv_sqrt_dk = 1.0 / math.sqrt(float(hidd))
    dw_bf = dw.astype(jnp.bfloat16)

    q = jnp.dot(feat.astype(jnp.bfloat16), wqt_ref[...],
                preferred_element_type=jnp.float32) + bq_ref[...]  # (B, hidd)

    # Reassociated scores (no k materialization):
    #   scores = (q @ Wk @ dict + q . bk) / sqrt(d_k)
    t = jnp.dot(q.astype(jnp.bfloat16), wk_ref[...],
                preferred_element_type=jnp.float32)                # (B, dim)
    s = jnp.dot(t.astype(jnp.bfloat16), dw_bf,
                preferred_element_type=jnp.float32)                # (B, nd)
    bias = jnp.sum(q * bk_ref[...], axis=-1, keepdims=True)        # (B, 1)
    scores = (s + bias) * inv_sqrt_dk

    m = jnp.max(scores, axis=-1, keepdims=True)
    p = jnp.exp(scores - m)
    probs = p * pl.reciprocal(jnp.sum(p, axis=-1, keepdims=True), approx=True)

    out = jnp.dot(probs.astype(jnp.bfloat16), dw_bf.T,
                  preferred_element_type=jnp.float32)              # (B, dim)
    out_ref[...] = (out + feat) * 0.5


def fea_refine_fused(feat2, dict_w, wq, bq, wk, bk):
    B, dim = feat2.shape
    hidd = wq.shape[0]
    nd = dict_w.shape[1]

    cost = pl.CostEstimate(
        flops=(2 * nd * dim * nd + 4 * dim * nd                    # cons
               + 2 * B * dim * hidd + 2 * B * hidd * dim
               + 2 * B * dim * nd + 2 * B * nd * dim
               + 8 * B * nd + 2 * B * hidd),
        transcendentals=nd + B * (nd + 1),
        bytes_accessed=(2 * B * dim * 4 + dim * nd * 4
                        + 2 * hidd * dim * 2 + 2 * hidd * 4 + nd * nd * 4))

    out, cons = pl.pallas_call(
        _fused_kernel,
        out_shape=(jax.ShapeDtypeStruct((B, dim), jnp.float32),
                   jax.ShapeDtypeStruct((nd, nd), jnp.float32)),
        in_specs=[_VMEM] * 6,
        out_specs=(_VMEM, _VMEM),
        cost_estimate=cost,
    )(feat2,
      dict_w.astype(jnp.float32),
      wq.T.astype(jnp.bfloat16),
      bq.reshape(1, hidd).astype(jnp.float32),
      wk.astype(jnp.bfloat16),
      bk.reshape(1, hidd).astype(jnp.float32))
    return out, cons


# ---------------------------------------------------------------------------
# Full FeaRefine forward.
# ---------------------------------------------------------------------------
def fea_refine(feat, dict_w, wq, bq, wk, bk, params=None):
    """feat: (B, dim, 1) f32 -> ((B, dim, 1), (num_dicts, num_dicts)).

    If `params` (from fea_refine_prepare) is supplied, only the small hot
    kernel runs per call and the cached `cons` is returned; otherwise a fused
    single pallas_call computes both outputs.
    """
    B, dim, N = feat.shape
    assert N == 1
    feat2 = feat[:, :, 0]
    if params is not None:
        out2 = fea_refine_attend(feat2, params)
        return out2[:, :, None], params.cons
    out2, cons = fea_refine_fused(feat2, dict_w, wq, bq, wk, bk)
    return out2[:, :, None], cons


# ---------------------------------------------------------------------------
# Pure-JAX reference (f32 replica of the PyTorch forward), for validation.
# ---------------------------------------------------------------------------
def fea_refine_reference(feat, dict_w, wq, bq, wk, bk):
    fm = dict_w / jnp.maximum(
        jnp.sqrt(jnp.sum(dict_w * dict_w, axis=0, keepdims=True)), 1e-12)
    cons = fm.T @ fm
    B = feat.shape[0]
    q = jnp.einsum('hd,bdn->bhn', wq, feat) + bq[None, :, None]
    value = jnp.broadcast_to(dict_w[None], (B,) + dict_w.shape)
    k = jnp.einsum('hd,bdm->bhm', wk, value) + bk[None, :, None]
    scores = jnp.einsum('bhn,bhm->bnm', q, k) / math.sqrt(k.shape[1])
    scores = jax.nn.softmax(scores, axis=-1)
    output = jnp.einsum('bnm,bdm->bnd', scores, value)
    out = (jnp.swapaxes(output, 1, 2) + feat) / 2.0
    return out, cons


if __name__ == "__main__":
    # Small shapes consistent with the module: feat (B, dim, 1)
    B, DIM, HIDD, ND = 2, 256, 64, 128

    key = jax.random.PRNGKey(0)
    k_feat, k_dict, k_wq, k_bq, k_wk, k_bk, k_big = jax.random.split(key, 7)

    feat = jax.random.normal(k_feat, (B, DIM, 1), dtype=jnp.float32)
    # nn.Embedding(dim, num_dicts).weight -> (dim, num_dicts)
    dict_w = jax.random.normal(k_dict, (DIM, ND), dtype=jnp.float32)
    # nn.Conv1d(dim, hidd, 1) -> weight (hidd, dim), bias (hidd,)
    wq = jax.random.normal(k_wq, (HIDD, DIM), dtype=jnp.float32) * 0.05
    bq = jax.random.normal(k_bq, (HIDD,), dtype=jnp.float32) * 0.05
    wk = jax.random.normal(k_wk, (HIDD, DIM), dtype=jnp.float32) * 0.05
    bk = jax.random.normal(k_bk, (HIDD,), dtype=jnp.float32) * 0.05

    out_ref, cons_ref = fea_refine_reference(feat, dict_w, wq, bq, wk, bk)

    # 1) Fused single-call path (caller cannot cache parameters).
    out_f, cons_f = fea_refine(feat, dict_w, wq, bq, wk, bk)
    jax.block_until_ready((out_f, cons_f))
    assert out_f.shape == (B, DIM, 1) and cons_f.shape == (ND, ND)
    assert jnp.allclose(out_f, out_ref, rtol=2e-2, atol=2e-2)
    assert jnp.allclose(cons_f, cons_ref, rtol=2e-2, atol=2e-2)

    # 2) Cached-parameter hot path (explicit one-time prepare).
    params = fea_refine_prepare(dict_w, wq, bq, wk, bk)
    jax.block_until_ready(params)
    out_c, cons_c = fea_refine(feat, dict_w, wq, bq, wk, bk, params=params)
    jax.block_until_ready((out_c, cons_c))
    assert jnp.allclose(out_c, out_ref, rtol=2e-2, atol=2e-2)
    assert jnp.allclose(cons_c, cons_ref, rtol=2e-2, atol=2e-2)

    # 3) Batched grid path (weights VMEM-resident across B tiles).
    BB = 128
    feat_big = jax.random.normal(k_big, (BB, DIM, 1), dtype=jnp.float32)
    out_big = fea_refine_attend(feat_big[:, :, 0], params, block_b=64)
    jax.block_until_ready(out_big)
    out_big_ref, _ = fea_refine_reference(feat_big, dict_w, wq, bq, wk, bk)
    assert jnp.allclose(out_big[:, :, None], out_big_ref, rtol=2e-2, atol=2e-2)

    print("KERNEL_OK")
</pallas_src>

<mosaic_0001>
module attributes {stable_mosaic.version = 11 : i64} {
  func.func @_fused_kernel(%arg0: memref<2x256xf32, #tpu.memory_space<vmem>>, %arg1: memref<256x128xf32, #tpu.memory_space<vmem>>, %arg2: memref<256x64xbf16, #tpu.memory_space<vmem>>, %arg3: memref<1x64xf32, #tpu.memory_space<vmem>>, %arg4: memref<64x256xbf16, #tpu.memory_space<vmem>>, %arg5: memref<1x64xf32, #tpu.memory_space<vmem>>, %arg6: memref<2x256xf32, #tpu.memory_space<vmem>>, %arg7: memref<128x128xf32, #tpu.memory_space<vmem>>) attributes {dimension_semantics = [], scalar_prefetch = 0 : i64, scratch_operands = 0 : i64, tpu.core_type = #tpu.core_type<tc>} {
    %c0 = arith.constant 0 : index
    %c0_0 = arith.constant 0 : index
    %0 = vector.load %arg1[%c0, %c0_0] : memref<256x128xf32, #tpu.memory_space<vmem>>, vector<256x128xf32>
    %1 = arith.mulf %0, %0 : vector<256x128xf32>
    %cst = arith.constant dense<0.000000e+00> : vector<128xf32>
    %2 = vector.multi_reduction <add>, %1, %cst [0] : vector<256x128xf32> to vector<128xf32>
    %3 = vector.shape_cast %2 : vector<128xf32> to vector<1x128xf32>
    %cst_1 = arith.constant 1.000000e-24 : f32
    %4 = vector.broadcast %cst_1 : f32 to vector<1x128xf32>
    %5 = arith.maximumf %3, %4 : vector<1x128xf32>
    %6 = math.rsqrt %5 : vector<1x128xf32>
    %7 = vector.broadcast %6 : vector<1x128xf32> to vector<256x128xf32>
    %8 = arith.mulf %0, %7 : vector<256x128xf32>
    %9 = tpu.transpose %8, [1, 0] : vector<256x128xf32> -> vector<128x256xf32>
    %cst_2 = arith.constant dense<0.000000e+00> : vector<128x128xf32>
    %10 = tpu.matmul %9, %8, %cst_2 {dimension_numbers = #tpu.dot_dimension_numbers<[1], [0], [0], [1], [0, 0, 1, 1], [], []>} : vector<128x256xf32>, vector<256x128xf32>, vector<128x128xf32> -> vector<128x128xf32>
    %c0_3 = arith.constant 0 : index
    %c0_4 = arith.constant 0 : index
    %11 = vector.load %arg7[%c0_3, %c0_4] : memref<128x128xf32, #tpu.memory_space<vmem>>, vector<128x128xf32>
    tpu.vector_store %arg7[%c0_3, %c0_4], %10 {strides = array<i32>} : memref<128x128xf32, #tpu.memory_space<vmem>>, vector<128x128xf32>,
    %c0_5 = arith.constant 0 : index
    %c0_6 = arith.constant 0 : index
    %12 = vector.load %arg0[%c0_5, %c0_6] : memref<2x256xf32, #tpu.memory_space<vmem>>, vector<2x256xf32>
    %13 = arith.truncf %0 : vector<256x128xf32> to vector<256x128xbf16>
    %14 = arith.truncf %12 : vector<2x256xf32> to vector<2x256xbf16>
    %c0_7 = arith.constant 0 : index
    %c0_8 = arith.constant 0 : index
    %15 = vector.load %arg2[%c0_7, %c0_8] : memref<256x64xbf16, #tpu.memory_space<vmem>>, vector<256x64xbf16>
    %cst_9 = arith.constant dense<0.000000e+00> : vector<2x64xf32>
    %16 = tpu.matmul %14, %15, %cst_9 {dimension_numbers = #tpu.dot_dimension_numbers<[1], [0], [0], [1], [0, 0, 1, 1], [], []>} : vector<2x256xbf16>, vector<256x64xbf16>, vector<2x64xf32> -> vector<2x64xf32>
    %c0_10 = arith.constant 0 : index
    %c0_11 = arith.constant 0 : index
    %17 = vector.load %arg3[%c0_10, %c0_11] : memref<1x64xf32, #tpu.memory_space<vmem>>, vector<1x64xf32>
    %18 = vector.broadcast %17 : vector<1x64xf32> to vector<2x64xf32>
    %19 = arith.addf %16, %18 : vector<2x64xf32>
    %20 = arith.truncf %19 : vector<2x64xf32> to vector<2x64xbf16>
    %c0_12 = arith.constant 0 : index
    %c0_13 = arith.constant 0 : index
    %21 = vector.load %arg4[%c0_12, %c0_13] : memref<64x256xbf16, #tpu.memory_space<vmem>>, vector<64x256xbf16>
    %cst_14 = arith.constant dense<0.000000e+00> : vector<2x256xf32>
    %22 = tpu.matmul %20, %21, %cst_14 {dimension_numbers = #tpu.dot_dimension_numbers<[1], [0], [0], [1], [0, 0, 1, 1], [], []>} : vector<2x64xbf16>, vector<64x256xbf16>, vector<2x256xf32> -> vector<2x256xf32>
    %23 = arith.truncf %22 : vector<2x256xf32> to vector<2x256xbf16>
    %cst_15 = arith.constant dense<0.000000e+00> : vector<2x128xf32>
    %24 = tpu.matmul %23, %13, %cst_15 {dimension_numbers = #tpu.dot_dimension_numbers<[1], [0], [0], [1], [0, 0, 1, 1], [], []>} : vector<2x256xbf16>, vector<256x128xbf16>, vector<2x128xf32> -> vector<2x128xf32>
    %c0_16 = arith.constant 0 : index
    %c0_17 = arith.constant 0 : index
    %25 = vector.load %arg5[%c0_16, %c0_17] : memref<1x64xf32, #tpu.memory_space<vmem>>, vector<1x64xf32>
    %26 = vector.broadcast %25 : vector<1x64xf32> to vector<2x64xf32>
    %27 = arith.mulf %19, %26 : vector<2x64xf32>
    %cst_18 = arith.constant dense<0.000000e+00> : vector<2xf32>
    %28 = vector.multi_reduction <add>, %27, %cst_18 [1] : vector<2x64xf32> to vector<2xf32>
    %29 = vector.shape_cast %28 : vector<2xf32> to vector<2x1xf32>
    %30 = vector.broadcast %29 : vector<2x1xf32> to vector<2x128xf32>
    %31 = arith.addf %24, %30 : vector<2x128xf32>
    %cst_19 = arith.constant 1.250000e-01 : f32
    %32 = vector.broadcast %cst_19 : f32 to vector<2x128xf32>
    %33 = arith.mulf %31, %32 : vector<2x128xf32>
    %cst_20 = arith.constant dense<0xFF800000> : vector<2xf32>
    %34 = vector.multi_reduction <maximumf>, %33, %cst_20 [1] : vector<2x128xf32> to vector<2xf32>
    %35 = vector.shape_cast %34 : vector<2xf32> to vector<2x1xf32>
    %36 = vector.broadcast %35 : vector<2x1xf32> to vector<2x128xf32>
    %37 = arith.subf %33, %36 : vector<2x128xf32>
    %38 = math.exp %37 : vector<2x128xf32>
    %cst_21 = arith.constant dense<0.000000e+00> : vector<2xf32>
    %39 = vector.multi_reduction <add>, %38, %cst_21 [1] : vector<2x128xf32> to vector<2xf32>
    %40 = vector.shape_cast %39 : vector<2xf32> to vector<2x1xf32>
    %41 = tpu.reciprocal %40 {approx = true} : vector<2x1xf32> -> vector<2x1xf32>
    %42 = vector.broadcast %41 : vector<2x1xf32> to vector<2x128xf32>
    %43 = arith.mulf %38, %42 : vector<2x128xf32>
    %44 = arith.truncf %43 : vector<2x128xf32> to vector<2x128xbf16>
    %45 = tpu.transpose %13, [1, 0] : vector<256x128xbf16> -> vector<128x256xbf16>
    %cst_22 = arith.constant dense<0.000000e+00> : vector<2x256xf32>
    %46 = tpu.matmul %44, %45, %cst_22 {dimension_numbers = #tpu.dot_dimension_numbers<[1], [0], [0], [1], [0, 0, 1, 1], [], []>} : vector<2x128xbf16>, vector<128x256xbf16>, vector<2x256xf32> -> vector<2x256xf32>
    %47 = arith.addf %46, %12 : vector<2x256xf32>
    %cst_23 = arith.constant 5.000000e-01 : f32
    %48 = vector.broadcast %cst_23 : f32 to vector<2x256xf32>
    %49 = arith.mulf %47, %48 : vector<2x256xf32>
    %c0_24 = arith.constant 0 : index
    %c0_25 = arith.constant 0 : index
    %50 = vector.load %arg6[%c0_24, %c0_25] : memref<2x256xf32, #tpu.memory_space<vmem>>, vector<2x256xf32>
    tpu.vector_store %arg6[%c0_24, %c0_25], %49 {strides = array<i32>} : memref<2x256xf32, #tpu.memory_space<vmem>>, vector<2x256xf32>,
    return
  }
}

</mosaic_0001>

<bundles_post_ra>
// kernel: tpu_custom_call.1
= control target key start
LH: loop header
LB: loop body
LE: loop exit
PB: predicated region body
PF: predicated region fallthrough
CT: control target
= control target key end

     0   :  { %13 = vsyncpa [#allocation3], 0  ;;  %s1788_s0 = inlined_call_operand.vmem [shape: f32[2,256], index: 0, kind: input, shape index: {}]   ;;  %s1789_s1 = inlined_call_operand.hbm [shape: f32[256,128], index: 1, kind: input, shape index: {}]   ;;  %s1790_s2 = inlined_call_operand.vmem [shape: bf16[256,64], index: 2, kind: input, shape index: {}]   ;;  %s1791_s3 = inlined_call_operand.vmem [shape: f32[1,64], index: 3, kind: input, shape index: {}]   ;;  %s1792_s4 = inlined_call_operand.vmem [shape: bf16[64,256], index: 4, kind: input, shape index: {}]   ;;  %s1793_s5 = inlined_call_operand.vmem [shape: f32[1,64], index: 5, kind: input, shape index: {}]   ;;  %s1794_s6 = inlined_call_operand.hbm [shape: f32[2,256], index: 6, kind: output, shape index: {0}]   ;;  %s1795_s7 = inlined_call_operand.hbm [shape: f32[128,128], index: 7, kind: output, shape index: {1}]  }
   0x1   :  { %14 = vsyncpa [#allocation4], 0 }
   0x2   :  { %15 = vsyncpa [#allocation7], 0  ;;  %s1283_s24 = smov [#allocation2]   ;;  %s1211_s28 = scalar_lea.hbm %s1789_s1, 4096 }
   0x3   :  { %s23_s25 = sshll.u32 %s1283_s24, 4  ;;  %p1212_p0 = scmp.ne.s32.totalorder %s1789_s1, %s1211_s28  ;;  %s24_s25 = int_to_ptr.vmem [resolvable:$true] %s23_s25 }
   0x4   :  { %p1215_p1 = scmp.lt.u32.totalorder %s1211_s28, %s1789_s1 }
   0x6   :  { %p1217_p2 = pnand %p1215_p1, %p1212_p0 }
   0x8   :  { %1220 = shalt.err (!%p1217_p2)
}
   0x9   :  { %s1221_s10 = scalar_lea.vmem %s24_s25, 4096  ;;  %p1226_p4 = scmp.lt.s32.totalorder %s24_s25, %s24_s25 }
   0xa   :  { %p1222_p3 = scmp.ne.s32.totalorder %s24_s25, %s1221_s10  ;;  %p1227_p5 = scmp.lt.s32.totalorder %s1221_s10, %s1221_s10 }
   0xc   :  { %p1228_p6 = por %p1227_p5, %p1226_p4 }
   0xe   :  { %p1229_p7 = pnand %p1228_p6, %p1222_p3 }
  0x10   :  { %1232 = shalt.err (!%p1229_p7)
}
  0x11   :  { %s1284_s11 = smov 128   ;;  %s1285_s12 = smov 8  }
  0x12   :  { %29 = dma.hbm_to_vmem [thread:$0]  %s1789_s1, 4096, %s24_s25, [#allocation3], %s1284_s11, %s1284_s11, %s1285_s12  }
  0x13   :  { %1277 = dma.done.wait [#allocation3], 4096  }
  0x14   :  { %1278 = vsyncadd [#allocation3], 4294963200  ;;  %v1176_v0 = vld [vmem:[%s1790_s2 + $0x40] sm:$0xff]   ;;  %v1178_v2 = vld [vmem:[%s1790_s2 + $0x48] sm:$0xff]   ;;  %v1286_v28 = vmov 0   ;;  %vm656_vm0 = vcmask 523264  }
  0x15   :  { %v1177_v1 = vld [vmem:[%s1790_s2] sm:$0xff]   ;;  %964 = vmatprep.subr.bf16.mxu1 %v1176_v0  ;;  %v1179_v3 = vld [vmem:[%s1790_s2 + $0x8] sm:$0xff]   ;;  %v1180_v4 = vld [vmem:[%s1790_s2 + $0x50] sm:$0xff]   ;;  %vm711_vm1 = vcmask 517120   ;;  %vm756_vm2 = vcmask 1041408  }
  0x16   :  { %965 = vmatpush3.bf16.msra.mxu1 %v1177_v1  ;;  %v1181_v5 = vld [vmem:[%s1790_s2 + $0x10] sm:$0xff]   ;;  %v1182_v6 = vld [vmem:[%s1790_s2 + $0x58] sm:$0xff]   ;;  %v1184_v8 = vld [vmem:[%s1790_s2 + $0x60] sm:$0xff]  }
  0x17   :  { %966 = vmatprep.subr.bf16.mxu1 %v1178_v2  ;;  %v1183_v7 = vld [vmem:[%s1790_s2 + $0x18] sm:$0xff]   ;;  %v1185_v9 = vld [vmem:[%s1790_s2 + $0x20] sm:$0xff]   ;;  %v1186_v10 = vld [vmem:[%s1790_s2 + $0x68] sm:$0xff]  }
  0x18   :  { %v855_v11 = vld.sshfl [vmem:[%s1788_s0] sm:$0x33 pattern:$0x76325410]  ;;  %v1187_v13 = vld [vmem:[%s1790_s2 + $0x28] sm:$0xff]   ;;  %v1188_v15 = vld [vmem:[%s1790_s2 + $0x70] sm:$0xff]  }
  0x19   :  { %v1380_v12 = vcombine.high %v855_v11, %v855_v11  ;;  %v1189_v16 = vld [vmem:[%s1790_s2 + $0x30] sm:$0xff]   ;;  %v1190_v17 = vld [vmem:[%s1790_s2 + $0x78] sm:$0xff]   ;;  %v1194_v19 = vld [vmem:[%s1792_s4 + $0x4] ss:$8 sps:$4 sm:$0xff]   ;;  %v430_v20 = vpack.c.bf16 %v855_v11, %v855_v11 }
  0x1a   :  { %967 = vmatpush3.bf16.msra.mxu1 %v1179_v3  ;;  %v1191_v18 = vld [vmem:[%s1790_s2 + $0x38] sm:$0xff]   ;;  %v1192_v21 = vld [vmem:[%s1792_s4] ss:$8 sps:$4 sm:$0xff]   ;;  %v1200_v24 = vld [vmem:[%s1792_s4 + $0x24] ss:$8 sps:$4 sm:$0xff]  }
  0x1b   :  { %968 = vmatprep.subr.bf16.mxu1 %v1180_v4  ;;  %1798 = vst [vmem:[#allocation11_spill] sm:$0xff] %v1380_v12  ;;  %v431_v14 = vpack.c.bf16 %v1380_v12, %v1380_v12  ;;  %v1197_v22 = vld [vmem:[%s1792_s4 + $0x14] ss:$8 sps:$4 sm:$0xff]   ;;  %v1195_v23 = vld [vmem:[%s1792_s4 + $0x10] ss:$8 sps:$4 sm:$0xff]   ;;  %v1429_v40 = vld [vmem:[#allocation2 + $0x80] sm:$0xff] }
  0x1c   :  { %v1198_v25 = vld [vmem:[%s1792_s4 + $0x20] ss:$8 sps:$4 sm:$0xff]   ;;  %v1203_v26 = vld [vmem:[%s1792_s4 + $0x34] ss:$8 sps:$4 sm:$0xff]   ;;  %v1201_v27 = vld [vmem:[%s1792_s4 + $0x30] ss:$8 sps:$4 sm:$0xff]  }
  0x1d   :  { %599 = vmatprep.mubr.bf16.mxu1 %v431_v14  ;;  %v856_v30 = vld [vmem:[%s1791_s3] ss:$0 sm:$0xff]  ;;  %v1431_v41 = vld [vmem:[#allocation2 + $0x88] sm:$0xff]  ;;  %v1441_v45 = vld [vmem:[#allocation2 + $0x90] sm:$0xff]  ;;  %s1287_s3 = smov [#allocation6]  }
  0x1e   :  { %969 = vmatpush3.bf16.msra.mxu1 %v1181_v5  ;;  %v882_v35 = vld [vmem:[%s1793_s5] ss:$0 sm:$0xff]  ;;  %v1437_v43 = vpack.c.bf16 %v1431_v41, %v1429_v40  ;;  %v1439_v44 = vld [vmem:[#allocation2 + $0x8] sm:$0xff]  ;;  %v1443_v46 = vld [vmem:[#allocation2 + $0x98] sm:$0xff]  ;;  %s839_s4 = sshll.u32 %s1287_s3, 4  ;;  %s840_s4 = int_to_ptr.vmem [resolvable:$true] %s839_s4 }
  0x1f   :  { %970 = vmatprep.subr.bf16.mxu1 %v1182_v6  ;;  %v1433_v42 = vld [vmem:[#allocation2] sm:$0xff]  ;;  %v1449_v48 = vld [vmem:[#allocation2 + $0x10] sm:$0xff]  ;;  %v1451_v49 = vld [vmem:[#allocation2 + $0x18] sm:$0xff]  ;;  %v1458_v51 = vpack.c.bf16 %v1443_v46, %v1441_v45  ;;  %s1233_s5 = scalar_lea.vmem %s840_s4, 2048  ;;  %p1238_p9 = scmp.lt.s32.totalorder %s840_s4, %s840_s4 }
  0x20   :  { %v1447_v47 = vpack.c.bf16 %v1439_v44, %v1433_v42  ;;  %v1453_v50 = vld [vmem:[#allocation2 + $0xa0] sm:$0xff]  ;;  %v1460_v52 = vld [vmem:[#allocation2 + $0xa8] sm:$0xff]  ;;  %v1465_v53 = vpack.c.bf16 %v1451_v49, %v1449_v48  ;;  %v1476_v57 = vld [vmem:[#allocation2 + $0xb0] sm:$0xff]  ;;  %p1234_p8 = scmp.ne.s32.totalorder %s840_s4, %s1233_s5  ;;  %p1239_p10 = scmp.lt.s32.totalorder %s1233_s5, %s1233_s5 }
  0x21   :  { %v1470_v54 = vpack.c.bf16 %v1460_v52, %v1453_v50  ;;  %v1472_v55 = vld [vmem:[#allocation2 + $0x20] sm:$0xff]  ;;  %v1474_v56 = vld [vmem:[#allocation2 + $0x28] sm:$0xff]  ;;  %v1478_v58 = vld [vmem:[#allocation2 + $0xb8] sm:$0xff] }
  0x22   :  { %971 = vmatpush3.bf16.msra.mxu1 %v1183_v7  ;;  %v1483_v59 = vpack.c.bf16 %v1474_v56, %v1472_v55  ;;  %v1488_v60 = vpack.c.bf16 %v1478_v58, %v1476_v57  ;;  %v1490_v61 = vld [vmem:[#allocation2 + $0x30] sm:$0xff]  ;;  %v1492_v62 = vld [vmem:[#allocation2 + $0x38] sm:$0xff]  ;;  %v1494_v63 = vld [vmem:[#allocation2 + $0xc0] sm:$0xff]  ;;  %p1240_p11 = por %p1239_p10, %p1238_p9 }
  0x23   :  { %972 = vmatprep.subr.bf16.mxu1 %v1184_v8  ;;  %v1496_v0 = vld [vmem:[#allocation2 + $0xc8] sm:$0xff]  ;;  %v1501_v1 = vpack.c.bf16 %v1492_v62, %v1490_v61  ;;  %v1508_v3 = vld [vmem:[#allocation2 + $0x40] sm:$0xff]  ;;  %v1512_v5 = vld [vmem:[#allocation2 + $0xd0] sm:$0xff] }
  0x24   :  { %v1506_v2 = vpack.c.bf16 %v1496_v0, %v1494_v63  ;;  %v1510_v4 = vld [vmem:[#allocation2 + $0x48] sm:$0xff]  ;;  %v1514_v6 = vld [vmem:[#allocation2 + $0xd8] sm:$0xff]  ;;  %v1530_v11 = vld [vmem:[#allocation2 + $0xe0] sm:$0xff]  ;;  %p1241_p12 = pnand %p1240_p11, %p1234_p8 }
  0x25   :  { %v1519_v7 = vpack.c.bf16 %v1510_v4, %v1508_v3  ;;  %v1524_v8 = vpack.c.bf16 %v1514_v6, %v1512_v5 }
  0x26   :  { %973 = vmatpush3.bf16.msra.mxu1 %v1185_v9  ;;  %v1526_v9 = vld [vmem:[#allocation2 + $0x50] sm:$0xff] }
  0x27   :  { %974 = vmatprep.subr.bf16.mxu1 %v1186_v10  ;;  %v1528_v10 = vld [vmem:[#allocation2 + $0x58] sm:$0xff] }
  0x28   :  { %v1537_v14 = vpack.c.bf16 %v1528_v10, %v1526_v9 }
  0x2a   :  { %975 = vmatpush3.bf16.msra.mxu1 %v1187_v13  ;;  %v1532_v13 = vld [vmem:[#allocation2 + $0xe8] sm:$0xff] }
  0x2b   :  { %976 = vmatprep.subr.bf16.mxu1 %v1188_v15  ;;  %v1542_v15 = vpack.c.bf16 %v1532_v13, %v1530_v11 }
  0x2e   :  { %977 = vmatpush3.bf16.msra.mxu1 %v1189_v16  ;;  %v1544_v16 = vld [vmem:[#allocation2 + $0x60] sm:$0xff] }
  0x2f   :  { %978 = vmatprep.subr.bf16.mxu1 %v1190_v17  ;;  %v1546_v17 = vld [vmem:[#allocation2 + $0x68] sm:$0xff] }
  0x32   :  { %979 = vmatpush3.bf16.msra.mxu1 %v1191_v18  ;;  %v1551_v18 = vpack.c.bf16 %v1546_v17, %v1544_v16 }
  0x33   :  { %660 = vmatprep.subr.bf16.mxu1 %v1194_v19  ;;  %v1555_v19 = vld [vmem:[#allocation2 + $0xf0] sm:$0xff] }
  0x35   :  { %600 = vmatmul.mubr.bf16.vlgmr.msra.gmra.mrb[0].mxu1 %v430_v20  ;;  %v1557_v20 = vld [vmem:[#allocation2 + $0xf8] sm:$0xff] }
  0x36   :  { %661 = vmatpush1.bf16.msra.mxu1 %v1192_v21  ;;  %692 = vmatprep.mubr.bf16.mxu1 %v1286_v28  ;;  %v1561_v21 = vpack.c.bf16 %v1557_v20, %v1555_v19  ;;  %v76_v28 = vmul.f32 %v1449_v48, %v1449_v48 }
  0x37   :  { %662 = vmatprep.subr.bf16.mxu1 %v1197_v22  ;;  %v1563_v22 = vld [vmem:[#allocation2 + $0x70] sm:$0xff] }
  0x3a   :  { %663 = vmatpush1.bf16.msra.mxu1 %v1195_v23  ;;  %v1565_v23 = vld [vmem:[#allocation2 + $0x78] sm:$0xff] }
  0x3b   :  { %664 = vmatprep.subr.bf16.mxu1 %v1200_v24  ;;  %v1569_v24 = vpack.c.bf16 %v1565_v23, %v1563_v22 }
  0x3d   :  { %1799 = vst [vmem:[#allocation12_spill] sm:$0xff] %v1569_v24 }
  0x3e   :  { %665 = vmatpush1.bf16.msra.mxu1 %v1198_v25  ;;  %v74_v25 = vmul.f32 %v1433_v42, %v1433_v42 }
  0x3f   :  { %666 = vmatprep.subr.bf16.mxu1 %v1203_v26  ;;  %v75_v26 = vmul.f32 %v1439_v44, %v1439_v44 }
  0x42   :  { %667 = vmatpush1.bf16.msra.mxu1 %v1201_v27  ;;  %v106_v27 = vadd.f32 %v75_v26, %v74_v25  ;;  %v82_v25 = vmul.f32 %v1508_v3, %v1508_v3  ;;  %v83_v26 = vmul.f32 %v1510_v4, %v1510_v4 }
  0x43   :  { %986 = vmatprep.subr.bf16.mxu1 %v1437_v43 }
 0x108   :  { %v980_v29 = vpop.f32.mrb[0].mxu1 }
 0x109   :  { %v981_v31 = vpop.f32.mrb[1].mxu1 }
 0x10a   :  { %v982_v32 = vadd.f32 %v981_v31, %v980_v29  ;;  %v983_v33 = vpop.f32.mrb[2].mxu1  ;;  %v77_v29 = vmul.f32 %v1451_v49, %v1451_v49 }
 0x10b   :  { %v984_v34 = vpop.f32.mrb[3].mxu1  ;;  %v79_v33 = vmul.f32 %v1474_v56, %v1474_v56 }
 0x10c   :  { %v602_v36 = vadd.f32 %v982_v32, %v856_v30  ;;  %v107_v30 = vadd.f32 %v106_v27, %v76_v28  ;;  %v78_v32 = vmul.f32 %v1472_v55, %v1472_v55 }
 0x10e   :  { %v607_v37 = vpack.c.bf16 %v602_v36, %v602_v36  ;;  %v710_v38 = vmul.f32 %v882_v35, %v602_v36  ;;  %v108_v31 = vadd.f32 %v107_v30, %v77_v29  ;;  %v80_v36 = vmul.f32 %v1490_v61, %v1490_v61 }
 0x10f   :  { %v84_v29 = vmul.f32 %v1526_v9, %v1526_v9  ;;  %v85_v30 = vmul.f32 %v1528_v10, %v1528_v10 }
 0x110   :  { %881 = vmatmul.mubr.msk.bf16.vlgmr.msra.gmra.mrb[4].mxu1 %vm656_vm0, %v607_v37  ;;  %v712_v39 = vsel %vm711_vm1, %v710_v38, 0.0  ;;  %v109_v34 = vadd.f32 %v108_v31, %v78_v32  ;;  %v81_v37 = vmul.f32 %v1492_v62, %v1492_v62 }
 0x111   :  { %713 = vadd.xlane.f32.xlu0 %v712_v39  ;;  %987 = vmatpush3.bf16.msra.mxu1 %v1447_v47 }
 0x112   :  { %988 = vmatprep.subr.bf16.mxu1 %v1458_v51  ;;  %v110_v35 = vadd.f32 %v109_v34, %v79_v33  ;;  %v86_v33 = vmul.f32 %v1544_v16, %v1544_v16  ;;  %v87_v34 = vmul.f32 %v1546_v17, %v1546_v17 }
 0x114   :  { %v111_v38 = vadd.f32 %v110_v35, %v80_v36 }
 0x115   :  { %989 = vmatpush3.bf16.msra.mxu1 %v1465_v53 }
 0x116   :  { %990 = vmatprep.subr.bf16.mxu1 %v1470_v54  ;;  %v112_v39 = vadd.f32 %v111_v38, %v81_v37  ;;  %v88_v37 = vmul.f32 %v1563_v22, %v1563_v22  ;;  %v89_v38 = vmul.f32 %v1565_v23, %v1565_v23 }
 0x118   :  { %v113_v27 = vadd.f32 %v112_v39, %v82_v25  ;;  %v90_v25 = vmul.f32 %v1429_v40, %v1429_v40 }
 0x119   :  { %991 = vmatpush3.bf16.msra.mxu1 %v1483_v59 }
 0x11a   :  { %992 = vmatprep.subr.bf16.mxu1 %v1488_v60  ;;  %v114_v28 = vadd.f32 %v113_v27, %v83_v26  ;;  %v91_v27 = vmul.f32 %v1431_v41, %v1431_v41 }
 0x11c   :  { %v115_v31 = vadd.f32 %v114_v28, %v84_v29  ;;  %v92_v29 = vmul.f32 %v1441_v45, %v1441_v45 }
 0x11d   :  { %993 = vmatpush3.bf16.msra.mxu1 %v1501_v1 }
 0x11e   :  { %994 = vmatprep.subr.bf16.mxu1 %v1506_v2  ;;  %v116_v32 = vadd.f32 %v115_v31, %v85_v30  ;;  %v93_v31 = vmul.f32 %v1443_v46, %v1443_v46 }
 0x120   :  { %v117_v35 = vadd.f32 %v116_v32, %v86_v33 }
 0x121   :  { %995 = vmatpush3.bf16.msra.mxu1 %v1519_v7 }
 0x122   :  { %996 = vmatprep.subr.bf16.mxu1 %v1524_v8  ;;  %v118_v36 = vadd.f32 %v117_v35, %v87_v34 }
 0x124   :  { %v119_v39 = vadd.f32 %v118_v36, %v88_v37 }
 0x125   :  { %997 = vmatpush3.bf16.msra.mxu1 %v1537_v14 }
 0x126   :  { %998 = vmatprep.subr.bf16.mxu1 %v1542_v15  ;;  %v120_v26 = vadd.f32 %v119_v39, %v89_v38  ;;  %v94_v38 = vmul.f32 %v1453_v50, %v1453_v50 }
 0x128   :  { %v121_v28 = vadd.f32 %v120_v26, %v90_v25  ;;  %v95_v25 = vmul.f32 %v1460_v52, %v1460_v52 }
 0x129   :  { %999 = vmatpush3.bf16.msra.mxu1 %v1551_v18 }
 0x12a   :  { %1000 = vmatprep.subr.bf16.mxu1 %v1561_v21  ;;  %v122_v30 = vadd.f32 %v121_v28, %v91_v27  ;;  %v96_v27 = vmul.f32 %v1476_v57, %v1476_v57 }
 0x12c   :  { %v123_v33 = vadd.f32 %v122_v30, %v92_v29  ;;  %v97_v29 = vmul.f32 %v1478_v58, %v1478_v58 }
 0x12d   :  { %1001 = vmatpush3.bf16.msra.mxu1 %v1569_v24 }
 0x12e   :  { %v124_v39 = vadd.f32 %v123_v33, %v93_v31  ;;  %v99_v31 = vmul.f32 %v1496_v0, %v1496_v0 }
 0x130   :  { %v125_v26 = vadd.f32 %v124_v39, %v94_v38  ;;  %v102_v38 = vmul.f32 %v1530_v11, %v1530_v11 }
 0x132   :  { %v126_v28 = vadd.f32 %v125_v26, %v95_v25  ;;  %v103_v25 = vmul.f32 %v1532_v13, %v1532_v13 }
 0x134   :  { %v127_v30 = vadd.f32 %v126_v28, %v96_v27  ;;  %v104_v27 = vmul.f32 %v1555_v19, %v1555_v19 }
 0x1e3   :  { %v694_v32 = vpop.f32.mrb[4].mxu1 }
 0x1e4   :  { %v696_v34 = vpop.f32.mrb[5].mxu1  ;;  %v701_v37 = vpack.c.bf16 %v694_v32, %v694_v32  ;;  %v128_v32 = vadd.f32 %v127_v30, %v97_v29  ;;  %v105_v29 = vmul.f32 %v1557_v20, %v1557_v20 }
 0x1e5   :  { %v702_v35 = vpack.c.bf16 %v696_v34, %v696_v34  ;;  %v698_v36 = vpop.f32.mrb[6].mxu1  ;;  %v100_v34 = vmul.f32 %v1512_v5, %v1512_v5 }
 0x1e6   :  { %v699_v12 = vpop.f32.mrb[7].mxu1  ;;  %v101_v36 = vmul.f32 %v1514_v6, %v1514_v6 }
 0x1e7   :  { %747 = vmatprep.mubr.bf16.mxu1 %v702_v35  ;;  %v98_v12 = vmul.f32 %v1494_v63, %v1494_v63 }
 0x1e8   :  { %748 = vmatmul.mubr.bf16.vlgmr.msra.gmra.mrb[8].mxu1 %v701_v37 }
 0x1e9   :  { %v129_v33 = vadd.f32 %v128_v32, %v98_v12 }
 0x1eb   :  { %v130_v35 = vadd.f32 %v129_v33, %v99_v31 }
 0x1ed   :  { %v131_v37 = vadd.f32 %v130_v35, %v100_v34 }
 0x1ef   :  { %v132_v39 = vadd.f32 %v131_v37, %v101_v36 }
 0x1f1   :  { %v133_v26 = vadd.f32 %v132_v39, %v102_v38 }
 0x1f3   :  { %v134_v28 = vadd.f32 %v133_v26, %v103_v25 }
 0x1f5   :  { %v135_v30 = vadd.f32 %v134_v28, %v104_v27 }
 0x1f7   :  { %v136_v12 = vadd.f32 %v135_v30, %v105_v29 }
 0x1f9   :  { %v137_v32 = vrot.slane %v136_v12, 4 }
 0x1fb   :  { %v138_v31 = vadd.f32 %v137_v32, %v136_v12 }
 0x1fd   :  { %v139_v33 = vrot.slane %v138_v31, 2 }
 0x1ff   :  { %v140_v34 = vadd.f32 %v139_v33, %v138_v31 }
 0x201   :  { %v141_v35 = vrot.slane %v140_v34, 1 }
 0x203   :  { %v142_v24 = vadd.f32 %v141_v35, %v140_v34  ;;  %v714_v34 = vpop.xlane.xlu0 %713 }
 0x205   :  { %v143_v36 = vmax.f32 %v142_v24, 1e-24 }
 0x207   :  { %1204 = vrsqrt.f32 %v143_v36 }
 0x211   :  { %v1637_v37 = vpop.eup %1204 }
 0x212   :  { %v1641_v38 = vmul.f32 %v1637_v37, %v1433_v42  ;;  %v1645_v39 = vmul.f32 %v1637_v37, %v1429_v40  ;;  %v1649_v25 = vmul.f32 %v1637_v37, %v1439_v44  ;;  %v1653_v26 = vmul.f32 %v1637_v37, %v1431_v41 }
 0x213   :  { %v1661_v27 = vmul.f32 %v1637_v37, %v1449_v48  ;;  %v163_v40 = vmul.f32 %v1637_v37, %v1441_v45  ;;  %v1668_v41 = vmul.f32 %v1637_v37, %v1451_v49  ;;  %v164_v28 = vmul.f32 %v1637_v37, %v1443_v46 }
 0x214   :  { %v1064_v24 = vpack.i.bf16 %v1641_v38, %v1645_v39  ;;  %v1066_v42 = vpack.i.bf16 %v1649_v25, %v1653_v26  ;;  %v1675_v48 = vmul.f32 %v1637_v37, %v1472_v55  ;;  %v165_v45 = vmul.f32 %v1637_v37, %v1453_v50 }
 0x215   :  { %v1068_v44 = vpack.i.bf16 %v1661_v27, %v163_v40  ;;  %v1070_v29 = vpack.i.bf16 %v1668_v41, %v164_v28  ;;  %v1682_v49 = vmul.f32 %v1637_v37, %v1474_v56  ;;  %v166_v46 = vmul.f32 %v1637_v37, %v1460_v52 }
 0x216   :  { %1065 = vxpose.xlu1.b32.start [1/16] %v1064_v24, 128  ;;  %v1072_v30 = vpack.i.bf16 %v1675_v48, %v165_v45  ;;  %v151_v52 = vmul.f32 %v1637_v37, %v1490_v61  ;;  %v167_v24 = vmul.f32 %v1637_v37, %v1476_v57  ;;  %v154_v61 = vmul.f32 %v1637_v37, %v1510_v4 }
 0x217   :  { %v1074_v12 = vpack.i.bf16 %v1682_v49, %v166_v46  ;;  %v170_v57 = vmul.f32 %v1637_v37, %v1496_v0  ;;  %v172_v4 = vmul.f32 %v1637_v37, %v1514_v6  ;;  %v157_v0 = vmul.f32 %v1637_v37, %v1544_v16 }
 0x218   :  { %v174_v6 = vmul.f32 %v1637_v37, %v1532_v13  ;;  %v1034_v16 = vpack.c.bf16 %v166_v46, %v165_v45  ;;  %v1036_v13 = vpack.c.bf16 %v1682_v49, %v1675_v48 }
 0x21a   :  { %1067 = vxpose.xlu1.b32.cont [2/16] %v1066_v42, 128  ;;  %v1076_v42 = vpack.i.bf16 %v151_v52, %v167_v24 }
 0x21e   :  { %1069 = vxpose.xlu1.b32.cont [3/16] %v1068_v44, 128  ;;  %v152_v44 = vmul.f32 %v1637_v37, %v1492_v62  ;;  %v1082_v62 = vpack.i.bf16 %v154_v61, %v170_v57 }
 0x222   :  { %1071 = vxpose.xlu1.b32.cont [4/16] %v1070_v29, 128  ;;  %v168_v29 = vmul.f32 %v1637_v37, %v1478_v58  ;;  %v155_v58 = vmul.f32 %v1637_v37, %v1526_v9  ;;  %v1026_v9 = vpack.c.bf16 %v1653_v26, %v1645_v39 }
 0x224   :  { %1027 = vmatprep.subr.bf16.mxu0 %v1026_v9 }
 0x226   :  { %1073 = vxpose.xlu1.b32.cont [5/16] %v1072_v30, 128  ;;  %v1078_v30 = vpack.i.bf16 %v152_v44, %v168_v29 }
 0x22a   :  { %1075 = vxpose.xlu1.b32.cont [6/16] %v1074_v12, 128  ;;  %v153_v12 = vmul.f32 %v1637_v37, %v1508_v3 }
 0x22e   :  { %1077 = vxpose.xlu1.b32.cont [7/16] %v1076_v42, 128 }
 0x232   :  { %1079 = vxpose.xlu1.b32.cont [8/16] %v1078_v30, 128 }
 0x2bb   :  { %v1002_v32 = vpop.f32.mrb[8].mxu1 }
 0x2bc   :  { %v1003_v55 = vpop.f32.mrb[9].mxu1 }
 0x2bd   :  { %v1004_v31 = vadd.f32 %v1003_v55, %v1002_v32  ;;  %v1005_v33 = vpop.f32.mrb[10].mxu1  ;;  %v169_v32 = vmul.f32 %v1637_v37, %v1494_v63  ;;  %v156_v63 = vmul.f32 %v1637_v37, %v1528_v10  ;;  %v158_v10 = vmul.f32 %v1637_v37, %v1546_v17 }
 0x2be   :  { %v1006_v50 = vpop.f32.mrb[11].mxu1  ;;  %v173_v33 = vmul.f32 %v1637_v37, %v1530_v11  ;;  %v1032_v11 = vpack.c.bf16 %v1668_v41, %v1661_v27  ;;  %v1038_v17 = vpack.c.bf16 %v168_v29, %v167_v24  ;;  %v160_v27 = vmul.f32 %v1637_v37, %v1565_v23 }
 0x2bf   :  { %v750_v35 = vadd.f32 %v1004_v31, %v714_v34  ;;  %v1080_v55 = vpack.i.bf16 %v153_v12, %v169_v32  ;;  %v171_v31 = vmul.f32 %v1637_v37, %v1512_v5  ;;  %v1086_v34 = vpack.i.bf16 %v156_v63, %v172_v4 }
 0x2c0   :  { %v1028_v5 = vpack.c.bf16 %v1649_v25, %v1641_v38  ;;  %v1088_v50 = vpack.i.bf16 %v157_v0, %v173_v33  ;;  %v1090_v39 = vpack.i.bf16 %v158_v10, %v174_v6  ;;  %v159_v38 = vmul.f32 %v1637_v37, %v1563_v22 }
 0x2c1   :  { %v1687_v36 = vmul.f32 0.125, %v750_v35  ;;  %1081 = vxpose.xlu1.b32.cont [9/16] %v1080_v55, 128  ;;  %v1084_v3 = vpack.i.bf16 %v155_v58, %v171_v31  ;;  %v1030_v35 = vpack.c.bf16 %v164_v28, %v163_v40  ;;  %v175_v25 = vmul.f32 %v1637_v37, %v1555_v19 }
 0x2c2   :  { %1029 = vmatpush3.bf16.msra.mxu0 %v1028_v5  ;;  %v176_v40 = vmul.f32 %v1637_v37, %v1557_v20  ;;  %v1040_v41 = vpack.c.bf16 %v152_v44, %v151_v52  ;;  %v1042_v22 = vpack.c.bf16 %v170_v57, %v169_v32  ;;  %v1044_v28 = vpack.c.bf16 %v154_v61, %v153_v12 }
 0x2c3   :  { %v757_v56 = vsel %vm756_vm2, %v1687_v36, -inf  ;;  %1031 = vmatprep.subr.bf16.mxu0 %v1030_v35  ;;  %v1092_v26 = vpack.i.bf16 %v159_v38, %v175_v25  ;;  %v1046_v48 = vpack.c.bf16 %v172_v4, %v171_v31  ;;  %v1048_v45 = vpack.c.bf16 %v156_v63, %v155_v58 }
 0x2c4   :  { %758 = vmax.xlane.f32.xlu0 %v757_v56  ;;  %v1094_v19 = vpack.i.bf16 %v160_v27, %v176_v40  ;;  %v1050_v49 = vpack.c.bf16 %v174_v6, %v173_v33  ;;  %v1052_v23 = vpack.c.bf16 %v158_v10, %v157_v0  ;;  %v1054_v46 = vpack.c.bf16 %v176_v40, %v175_v25 }
 0x2c5   :  { %1083 = vxpose.xlu1.b32.cont [10/16] %v1082_v62, 128  ;;  %v1056_v20 = vpack.c.bf16 %v160_v27, %v159_v38 }
 0x2c6   :  { %1033 = vmatpush3.bf16.msra.mxu0 %v1032_v11 }
 0x2c7   :  { %1035 = vmatprep.subr.bf16.mxu0 %v1034_v16 }
 0x2c9   :  { %1085 = vxpose.xlu1.b32.cont [11/16] %v1084_v3, 128 }
 0x2ca   :  { %1037 = vmatpush3.bf16.msra.mxu0 %v1036_v13 }
 0x2cb   :  { %1039 = vmatprep.subr.bf16.mxu0 %v1038_v17 }
 0x2cd   :  { %1087 = vxpose.xlu1.b32.cont [12/16] %v1086_v34, 128 }
 0x2ce   :  { %1041 = vmatpush3.bf16.msra.mxu0 %v1040_v41 }
 0x2cf   :  { %1043 = vmatprep.subr.bf16.mxu0 %v1042_v22  ;;  %v1800_v22 = vld [vmem:[#allocation12_spill] sm:$0xff] }
 0x2d1   :  { %1089 = vxpose.xlu1.b32.cont [13/16] %v1088_v50, 128 }
 0x2d2   :  { %1045 = vmatpush3.bf16.msra.mxu0 %v1044_v28 }
 0x2d3   :  { %1047 = vmatprep.subr.bf16.mxu0 %v1046_v48 }
 0x2d5   :  { %1091 = vxpose.xlu1.b32.cont [14/16] %v1090_v39, 128 }
 0x2d6   :  { %1049 = vmatpush3.bf16.msra.mxu0 %v1048_v45 }
 0x2d7   :  { %1051 = vmatprep.subr.bf16.mxu0 %v1050_v49 }
 0x2d9   :  { %1093 = vxpose.xlu1.b32.cont [15/16] %v1092_v26, 128 }
 0x2da   :  { %1053 = vmatpush3.bf16.msra.mxu0 %v1052_v23 }
 0x2db   :  { %1055 = vmatprep.subr.bf16.mxu0 %v1054_v46 }
 0x2dd   :  { %1095 = vxpose.xlu1.b32.end [16/16] %v1094_v19, 128 }
 0x2de   :  { %1057 = vmatpush3.bf16.msra.mxu0 %v1056_v20 }
 0x2df   :  { %1008 = vmatprep.subr.bf16.mxu0 %v1437_v43 }
 0x321   :  { %v1096_v37 = vpop.trf.xlu1 }
 0x322   :  { %v1097_v56 = vunpack.i.l.bf16 %v1096_v37  ;;  %v1100_v52 = vunpack.i.h.bf16 %v1096_v37 }
 0x324   :  { %305 = vmatprep.mubr.f32.mxu0 %v1097_v56 }
 0x325   :  { %v1101_v24 = vpop.trf.xlu1  ;;  %306 = vmatmul.mubr.f32.vlgmr.msra.gmra.mrb[0].mxu0 %v1100_v52 }
 0x326   :  { %1009 = vmatpush3.bf16.xpose.msra.mxu0 %v1447_v47  ;;  %v1102_v42 = vunpack.i.l.bf16 %v1101_v24  ;;  %v1105_v44 = vunpack.i.h.bf16 %v1101_v24 }
 0x327   :  { %1010 = vmatprep.subr.bf16.mxu0 %v1458_v51 }
 0x328   :  { %310 = vmatprep.mubr.f32.mxu0 %v1102_v42 }
 0x329   :  { %v1106_v29 = vpop.trf.xlu1  ;;  %311 = vmatmul.mubr.f32.gmra.mrb[2].mxu0 %v1105_v44 }
 0x32a   :  { %v1107_v30 = vunpack.i.l.bf16 %v1106_v29  ;;  %v1110_v12 = vunpack.i.h.bf16 %v1106_v29 }
 0x32c   :  { %315 = vmatprep.mubr.f32.mxu0 %v1107_v30 }
 0x32d   :  { %v1111_v32 = vpop.trf.xlu1  ;;  %316 = vmatmul.mubr.f32.gmra.mrb[4].mxu0 %v1110_v12 }
 0x32e   :  { %1011 = vmatpush3.bf16.xpose.msra.mxu0 %v1465_v53  ;;  %v1112_v43 = vunpack.i.l.bf16 %v1111_v32  ;;  %v1115_v61 = vunpack.i.h.bf16 %v1111_v32 }
 0x32f   :  { %1012 = vmatprep.subr.bf16.mxu0 %v1470_v54 }
 0x330   :  { %320 = vmatprep.mubr.f32.mxu0 %v1112_v43 }
 0x331   :  { %v1116_v47 = vpop.trf.xlu1  ;;  %321 = vmatmul.mubr.f32.gmra.mrb[6].mxu0 %v1115_v61 }
 0x332   :  { %v1117_v57 = vunpack.i.l.bf16 %v1116_v47  ;;  %v1120_v55 = vunpack.i.h.bf16 %v1116_v47 }
 0x334   :  { %325 = vmatprep.mubr.f32.mxu0 %v1117_v57 }
 0x335   :  { %v1121_v51 = vpop.trf.xlu1  ;;  %326 = vmatmul.mubr.f32.gmra.mrb[8].mxu0 %v1120_v55 }
 0x336   :  { %1013 = vmatpush3.bf16.xpose.msra.mxu0 %v1483_v59  ;;  %v1122_v62 = vunpack.i.l.bf16 %v1121_v51  ;;  %v1125_v58 = vunpack.i.h.bf16 %v1121_v51 }
 0x337   :  { %1014 = vmatprep.subr.bf16.mxu0 %v1488_v60 }
 0x338   :  { %330 = vmatprep.mubr.f32.mxu0 %v1122_v62 }
 0x339   :  { %v1126_v3 = vpop.trf.xlu1  ;;  %331 = vmatmul.mubr.f32.gmra.mrb[10].mxu0 %v1125_v58 }
 0x33a   :  { %v1127_v54 = vunpack.i.l.bf16 %v1126_v3  ;;  %v1130_v63 = vunpack.i.h.bf16 %v1126_v3 }
 0x33c   :  { %335 = vmatprep.mubr.f32.mxu0 %v1127_v54 }
 0x33d   :  { %v1131_v0 = vpop.trf.xlu1  ;;  %336 = vmatmul.mubr.f32.gmra.mrb[12].mxu0 %v1130_v63 }
 0x33e   :  { %1015 = vmatpush3.bf16.xpose.msra.mxu0 %v1501_v1  ;;  %v1132_v59 = vunpack.i.l.bf16 %v1131_v0  ;;  %v1135_v33 = vunpack.i.h.bf16 %v1131_v0 }
 0x33f   :  { %1016 = vmatprep.subr.bf16.mxu0 %v1506_v2 }
 0x340   :  { %340 = vmatprep.mubr.f32.mxu0 %v1132_v59 }
 0x341   :  { %v1136_v60 = vpop.trf.xlu1  ;;  %341 = vmatmul.mubr.f32.gmra.mrb[14].mxu0 %v1135_v33 }
 0x342   :  { %v1137_v34 = vunpack.i.l.bf16 %v1136_v60 }
 0x344   :  { %345 = vmatprep.mubr.f32.mxu0 %v1137_v34 }
 0x345   :  { %v1141_v9 = vpop.trf.xlu1 }
 0x346   :  { %1017 = vmatpush3.bf16.xpose.msra.mxu0 %v1519_v7  ;;  %v1142_v5 = vunpack.i.l.bf16 %v1141_v9  ;;  %v1145_v50 = vunpack.i.h.bf16 %v1141_v9 }
 0x347   :  { %1018 = vmatprep.subr.bf16.mxu0 %v1524_v8 }
 0x349   :  { %v1146_v2 = vpop.trf.xlu1 }
 0x34a   :  { %v1147_v6 = vunpack.i.l.bf16 %v1146_v2  ;;  %v1150_v35 = vunpack.i.h.bf16 %v1146_v2 }
 0x34d   :  { %v1151_v11 = vpop.trf.xlu1 }
 0x34e   :  { %1019 = vmatpush3.bf16.xpose.msra.mxu0 %v1537_v14  ;;  %v1152_v16 = vunpack.i.l.bf16 %v1151_v11  ;;  %v1155_v7 = vunpack.i.h.bf16 %v1151_v11 }
 0x34f   :  { %1020 = vmatprep.subr.bf16.mxu0 %v1542_v15 }
 0x351   :  { %v759_v31 = vpop.xlane.xlu0 %758  ;;  %v1156_v39 = vpop.trf.xlu1 }
 0x352   :  { %v760_v53 = vsub.f32 %v1687_v36, %v759_v31  ;;  %v1140_v36 = vunpack.i.h.bf16 %v1136_v60  ;;  %v1157_v8 = vunpack.i.l.bf16 %v1156_v39  ;;  %v1160_v38 = vunpack.i.h.bf16 %v1156_v39 }
 0x354   :  { %v761_v4 = vmul.f32 1.442695, %v760_v53  ;;  %346 = vmatmul.mubr.f32.gmra.mrb[16].mxu0 %v1140_v36 }
 0x355   :  { %350 = vmatprep.mubr.f32.mxu0 %v1142_v5  ;;  %v1161_v25 = vpop.trf.xlu1 }
 0x356   :  { %1206 = vpow2.f32 %v761_v4  ;;  %1021 = vmatpush3.bf16.xpose.msra.mxu0 %v1551_v18  ;;  %v1162_v13 = vunpack.i.l.bf16 %v1161_v25  ;;  %v1165_v17 = vunpack.i.h.bf16 %v1161_v25 }
 0x357   :  { %1022 = vmatprep.subr.bf16.mxu0 %v1561_v21 }
 0x358   :  { %351 = vmatmul.mubr.f32.gmra.mrb[18].mxu0 %v1145_v50 }
 0x359   :  { %355 = vmatprep.mubr.f32.mxu0 %v1147_v6  ;;  %v1166_v14 = vpop.trf.xlu1 }
 0x35a   :  { %v1167_v26 = vunpack.i.l.bf16 %v1166_v14  ;;  %v1170_v27 = vunpack.i.h.bf16 %v1166_v14 }
 0x35c   :  { %356 = vmatmul.mubr.f32.gmra.mrb[20].mxu0 %v1150_v35 }
 0x35d   :  { %360 = vmatprep.mubr.f32.mxu0 %v1152_v16  ;;  %v1171_v15 = vpop.trf.xlu1 }
 0x35e   :  { %v1175_v40 = vunpack.i.h.bf16 %v1171_v15  ;;  %v1172_v41 = vunpack.i.l.bf16 %v1171_v15  ;;  %1023 = vmatpush3.bf16.xpose.msra.mxu0 %v1800_v22 }
 0x360   :  { %v1207_v10 = vpop.eup %1206  ;;  %361 = vmatmul.mubr.f32.gmra.mrb[22].mxu0 %v1155_v7 }
 0x361   :  { %v763_v1 = vsel %vm756_vm2, %v1207_v10, 0.0  ;;  %365 = vmatprep.mubr.f32.mxu0 %v1157_v8 }
 0x362   :  { %764 = vadd.xlane.f32.xlu0 %v763_v1 }
 0x364   :  { %366 = vmatmul.mubr.f32.gmra.mrb[24].mxu0 %v1160_v38 }
 0x365   :  { %370 = vmatprep.mubr.f32.mxu0 %v1162_v13 }
 0x368   :  { %371 = vmatmul.mubr.f32.gmra.mrb[26].mxu0 %v1165_v17 }
 0x369   :  { %375 = vmatprep.mubr.f32.mxu0 %v1167_v26 }
 0x36c   :  { %376 = vmatmul.mubr.f32.gmra.mrb[28].mxu0 %v1170_v27 }
 0x36d   :  { %380 = vmatprep.mubr.f32.mxu0 %v1172_v41 }
 0x370   :  { %381 = vmatmul.mubr.f32.gmra.mrb[30].mxu0 %v1175_v40 }
 0x3ef   :  { %v765_v19 = vpop.xlane.xlu0 %764 }
 0x3f0   :  { %1208 = vrcp.f32 %v765_v19 }
 0x3f8   :  { %v916_v21 = vpop.f32.mrb[0].mxu0 }
 0x3f9   :  { %v917_v45 = vpop.f32.mrb[1].mxu0 }
 0x3fa   :  { %v1209_v18 = vpop.eup %1208  ;;  %v918_v49 = vadd.f32 %v917_v45, %v916_v21 }
 0x3fb   :  { %v767_v28 = vmul.f32 %v1209_v18, %v1207_v10 }
 0x3fc   :  { %386 = vst [vmem:[#allocation6] sm:$0xff] %v918_v49  ;;  %v919_v23 = vpop.f32.mrb[2].mxu0 }
 0x3fd   :  { %v768_v48 = vpack.c.bf16 %v767_v28, %v767_v28  ;;  %v920_v46 = vpop.f32.mrb[3].mxu0 }
 0x3fe   :  { %v921_v20 = vadd.f32 %v920_v46, %v919_v23 }
 0x3ff   :  { %1024 = vmatprep.mubr.bf16.mxu0 %v768_v48 }
 0x400   :  { %1025 = vmatmul.mubr.bf16.vlgmr.msra.gmra.mrb[32].mxu0 %v768_v48  ;;  %387 = vst [vmem:[#allocation6 + $0x8] sm:$0xff] %v921_v20  ;;  %v922_v37 = vpop.f32.mrb[4].mxu0 }
 0x401   :  { %v923_v56 = vpop.f32.mrb[5].mxu0 }
 0x402   :  { %v924_v52 = vadd.f32 %v923_v56, %v922_v37 }
 0x404   :  { %388 = vst [vmem:[#allocation6 + $0x10] sm:$0xff] %v924_v52  ;;  %v925_v24 = vpop.f32.mrb[6].mxu0 }
 0x405   :  { %v926_v42 = vpop.f32.mrb[7].mxu0 }
 0x406   :  { %v927_v44 = vadd.f32 %v926_v42, %v925_v24 }
 0x408   :  { %389 = vst [vmem:[#allocation6 + $0x18] sm:$0xff] %v927_v44  ;;  %v928_v29 = vpop.f32.mrb[8].mxu0 }
 0x409   :  { %v929_v30 = vpop.f32.mrb[9].mxu0 }
 0x40a   :  { %v930_v12 = vadd.f32 %v929_v30, %v928_v29 }
 0x40c   :  { %390 = vst [vmem:[#allocation6 + $0x20] sm:$0xff] %v930_v12  ;;  %v931_v32 = vpop.f32.mrb[10].mxu0 }
 0x40d   :  { %v932_v43 = vpop.f32.mrb[11].mxu0 }
 0x40e   :  { %v933_v61 = vadd.f32 %v932_v43, %v931_v32 }
 0x410   :  { %391 = vst [vmem:[#allocation6 + $0x28] sm:$0xff] %v933_v61  ;;  %v934_v47 = vpop.f32.mrb[12].mxu0 }
 0x411   :  { %v935_v57 = vpop.f32.mrb[13].mxu0 }
 0x412   :  { %v936_v55 = vadd.f32 %v935_v57, %v934_v47 }
 0x414   :  { %392 = vst [vmem:[#allocation6 + $0x30] sm:$0xff] %v936_v55  ;;  %v937_v51 = vpop.f32.mrb[14].mxu0 }
 0x415   :  { %v938_v62 = vpop.f32.mrb[15].mxu0 }
 0x416   :  { %v939_v58 = vadd.f32 %v938_v62, %v937_v51 }
 0x418   :  { %393 = vst [vmem:[#allocation6 + $0x38] sm:$0xff] %v939_v58 }
 0x427   :  { %v940_v31 = vpop.f32.mrb[16].mxu0 }
 0x428   :  { %v941_v53 = vpop.f32.mrb[17].mxu0 }
 0x429   :  { %v942_v3 = vadd.f32 %v941_v53, %v940_v31 }
 0x42b   :  { %394 = vst [vmem:[#allocation6 + $0x40] sm:$0xff] %v942_v3  ;;  %v943_v54 = vpop.f32.mrb[18].mxu0 }
 0x42c   :  { %v944_v63 = vpop.f32.mrb[19].mxu0 }
 0x42d   :  { %v945_v4 = vadd.f32 %v944_v63, %v943_v54 }
 0x42f   :  { %395 = vst [vmem:[#allocation6 + $0x48] sm:$0xff] %v945_v4  ;;  %v946_v0 = vpop.f32.mrb[20].mxu0 }
 0x430   :  { %v947_v59 = vpop.f32.mrb[21].mxu0 }
 0x431   :  { %v948_v33 = vadd.f32 %v947_v59, %v946_v0 }
 0x433   :  { %396 = vst [vmem:[#allocation6 + $0x50] sm:$0xff] %v948_v33  ;;  %v949_v60 = vpop.f32.mrb[22].mxu0 }
 0x434   :  { %v950_v34 = vpop.f32.mrb[23].mxu0 }
 0x435   :  { %v951_v36 = vadd.f32 %v950_v34, %v949_v60 }
 0x437   :  { %397 = vst [vmem:[#allocation6 + $0x58] sm:$0xff] %v951_v36  ;;  %v952_v9 = vpop.f32.mrb[24].mxu0 }
 0x438   :  { %v953_v5 = vpop.f32.mrb[25].mxu0 }
 0x439   :  { %v954_v50 = vadd.f32 %v953_v5, %v952_v9 }
 0x43b   :  { %398 = vst [vmem:[#allocation6 + $0x60] sm:$0xff] %v954_v50  ;;  %v955_v10 = vpop.f32.mrb[26].mxu0 }
 0x43c   :  { %v956_v1 = vpop.f32.mrb[27].mxu0 }
 0x43d   :  { %v957_v2 = vadd.f32 %v956_v1, %v955_v10 }
 0x43f   :  { %399 = vst [vmem:[#allocation6 + $0x68] sm:$0xff] %v957_v2  ;;  %v958_v6 = vpop.f32.mrb[28].mxu0 }
 0x440   :  { %v959_v35 = vpop.f32.mrb[29].mxu0 }
 0x441   :  { %v960_v11 = vadd.f32 %v959_v35, %v958_v6 }
 0x443   :  { %400 = vst [vmem:[#allocation6 + $0x70] sm:$0xff] %v960_v11  ;;  %v961_v16 = vpop.f32.mrb[30].mxu0 }
 0x444   :  { %v962_v7 = vpop.f32.mrb[31].mxu0 }
 0x445   :  { %v963_v39 = vadd.f32 %v962_v7, %v961_v16 }
 0x447   :  { %401 = vst [vmem:[#allocation6 + $0x78] sm:$0xff] %v963_v39 }
 0x448   :  { %1244 = shalt.err (!%p1241_p12)
}
 0x449   :  { %s1245_s25 = scalar_lea.hbm %s1795_s7, 2048 }
 0x44a   :  { %p1246_p13 = scmp.ne.s32.totalorder %s1795_s7, %s1245_s25  ;;  %p1249_p0 = scmp.lt.u32.totalorder %s1245_s25, %s1795_s7 }
 0x44c   :  { %p1251_p1 = pnand %p1249_p0, %p1246_p13 }
 0x44e   :  { %1254 = shalt.err (!%p1251_p1)
}
 0x44f   :  { %845 = dma.vmem_to_hbm [thread:$0]  %s840_s4, 2048, %s1795_s7, [#allocation7], %s1284_s11, %s1284_s11, %s1285_s12   ;;  %v1801_v17 = vld [vmem:[#allocation11_spill] sm:$0xff] }
 0x450   :  { %v1210_v38 = vld.sshfl [vmem:[%s1788_s0] sm:$0x33 pattern:$0x76325410]  ;;  %s1288_s10 = smov [#allocation5]  }
 0x451   :  { %s830_s13 = sshll.u32 %s1288_s10, 4  ;;  %s831_s13 = int_to_ptr.vmem [resolvable:$true] %s830_s13 }
 0x452   :  { %s1255_s14 = scalar_lea.vmem %s831_s13, 64  ;;  %p1260_p3 = scmp.lt.s32.totalorder %s831_s13, %s831_s13 }
 0x453   :  { %p1256_p2 = scmp.ne.s32.totalorder %s831_s13, %s1255_s14  ;;  %p1261_p4 = scmp.lt.s32.totalorder %s1255_s14, %s1255_s14 }
 0x455   :  { %p1262_p5 = por %p1261_p4, %p1260_p3 }
 0x457   :  { %p1263_p6 = pnand %p1262_p5, %p1256_p2 }
 0x4d3   :  { %v803_v8 = vpop.f32.mrb[32].mxu0 }
 0x4d4   :  { %v804_v25 = vadd.f32 %v1210_v38, %v803_v8  ;;  %v805_v13 = vpop.f32.mrb[33].mxu0 }
 0x4d5   :  { %v806_v14 = vadd.f32 %v805_v13, %v1801_v17  ;;  %v807_v26 = vpop.f32.mrb[34].mxu0 }
 0x4d6   :  { %v810_v27 = vmul.f32 0.5, %v804_v25  ;;  %v808_v15 = vpop.f32.mrb[35].mxu0 }
 0x4d7   :  { %v811_v40 = vmul.f32 0.5, %v806_v14 }
 0x4d9   :  { %v814_v41 = vcombine.low %v810_v27, %v811_v40 }
 0x4db   :  { %883 = vst.sshfl [vmem:[#allocation5] sm:$0x33 pattern:$0x76325410] %v814_v41 }
 0x4dc   :  { %1266 = shalt.err (!%p1263_p6)
}
 0x4dd   :  { %s1267_s11 = scalar_lea.hbm %s1794_s6, 64 }
 0x4de   :  { %p1268_p7 = scmp.ne.s32.totalorder %s1794_s6, %s1267_s11  ;;  %p1271_p8 = scmp.lt.u32.totalorder %s1267_s11, %s1794_s6 }
 0x4e0   :  { %p1273_p9 = pnand %p1271_p8, %p1268_p7 }
 0x4e2   :  { %1276 = shalt.err (!%p1273_p9)
}
 0x4e3   :  { %833 = dma.vmem_to_hbm [thread:$0]  %s831_s13, 64, %s1794_s6, [#allocation4]  }
 0x4e4   :  { %1279 = dma.done.wait [#allocation4], 64  }
 0x4e5   :  { %1280 = vsyncadd [#allocation4], 4294967232 }
 0x4e6   :  { %1281 = dma.done.wait [#allocation7], 2048  }
 0x4e7   :  { %1282 = vsyncadd [#allocation7], 4294965248 }
 0x4e8   :  { %852 = vsyncpa [#allocation3], 1 }
 0x4e9   :  { %853 = vsyncpa [#allocation4], 1 }
 0x4ea   :  { %854 = vsyncpa [#allocation7], 1 }

</bundles_post_ra>
